<compile_context>
chip_gen: v7x
topology: tpu7x:2x2x1
jax: 0.10.0
libtpu: 0.0.40
codegen_flags: <defaults>
</compile_context>

<pallas_src>
import jax
import jax.numpy as jnp
from jax.experimental import pallas as pl
from jax.experimental.pallas import tpu as pltpu

_LANES = 128            # vreg lane width: keep the last dim lane-dense
_MAX_TILE_ROWS = 8192   # 8192 x 128 x 4 B = 4 MiB per VMEM buffer
_VMEM_LIMIT_BYTES = 32 * 1024 * 1024  # raises v5e's 16 MiB scoped default;
                                      # 4 double-buffered 4 MiB tiles = 16 MiB,
                                      # well under v7x's 64 MiB physical VMEM.


def relu_kernel(x_ref, o_ref):
    # Pure elementwise max over a lane-dense (tile_rows, 128) tile.
    o_ref[...] = jnp.maximum(x_ref[...], jnp.zeros((), dtype=o_ref.dtype))


def f1_forward(x_nchw):
    """Returns relu(x) with the same shape/dtype as x (matches F1.forward)."""
    orig_shape = x_nchw.shape
    dtype = x_nchw.dtype
    total = 1
    for d in orig_shape:
        total *= d

    if total % _LANES != 0:
        # TODO(synk): totals not divisible by 128 are rare for NN tensors;
        # fall back to XLA's fused elementwise ReLU instead of paying an
        # extra pad+slice HBM round-trip to build a lane-dense Pallas slab.
        return jnp.maximum(x_nchw, jnp.zeros((), dtype=dtype))

    # View the contiguous NCHW buffer as a lane-dense 2-D slab (rows, 128).
    # ReLU is layout-agnostic, so no NCHW<->NHWC transposes are needed.
    rows = total // _LANES
    x2d = x_nchw.reshape(rows, _LANES)

    if rows <= _MAX_TILE_ROWS:
        # Single block covering the full array: block_shape == array dims, so
        # there is no (8, 128) divisibility requirement and no masking.
        tile_rows = rows
    else:
        # >= 2 grid steps; make the step count even so the "parallel" axis
        # shards evenly across both v7x TensorCores, and keep the tile
        # sublane-aligned (multiple of 8). The last block may be partial:
        # Pallas masks the out-of-bounds write and the garbage read in the
        # padded region is harmless for a pure elementwise op.
        num_blocks = pl.cdiv(rows, _MAX_TILE_ROWS)
        if num_blocks % 2:
            num_blocks += 1
        tile_rows = ((pl.cdiv(rows, num_blocks) + 7) // 8) * 8

    grid = (pl.cdiv(rows, tile_rows),)

    out2d = pl.pallas_call(
        relu_kernel,
        out_shape=jax.ShapeDtypeStruct((rows, _LANES), dtype),
        grid=grid,
        in_specs=[pl.BlockSpec((tile_rows, _LANES), lambda i: (i, 0))],
        out_specs=pl.BlockSpec((tile_rows, _LANES), lambda i: (i, 0)),
        compiler_params=pltpu.CompilerParams(
            dimension_semantics=("parallel",),
            vmem_limit_bytes=_VMEM_LIMIT_BYTES,
        ),
    )(x2d)

    return out2d.reshape(orig_shape)


if __name__ == "__main__":
    key = jax.random.PRNGKey(0)
    # Conv2d(3, 3, 1, 1) implies 3 input channels.
    N, C, H, W = 2, 3, 16, 16
    x = jax.random.normal(key, (N, C, H, W), dtype=jnp.float32)

    fwd = jax.jit(f1_forward)
    out = jax.block_until_ready(fwd(x))

    # Sanity check against the reference semantics: out == relu(x).
    ref = jnp.maximum(x, 0.0)
    assert out.shape == (N, C, H, W)
    assert out.dtype == x.dtype
    assert jnp.allclose(out, ref, atol=0.0)

    print("KERNEL_OK")
</pallas_src>

<mosaic_0001>
module attributes {stable_mosaic.version = 11 : i64} {
  func.func @relu_kernel(%arg0: i32, %arg1: memref<12x128xf32, #tpu.memory_space<vmem>>, %arg2: memref<12x128xf32, #tpu.memory_space<vmem>>) attributes {dimension_semantics = [#tpu.dimension_semantics<parallel>], iteration_bounds = array<i64: 1>, scalar_prefetch = 0 : i64, scratch_operands = 0 : i64, tpu.core_type = #tpu.core_type<tc>, window_params = [{transform_indices = @transform_0, window_bounds = array<i64: 12, 128>}, {transform_indices = @transform_1, window_bounds = array<i64: 12, 128>}]} {
    %c0 = arith.constant 0 : index
    %c0_0 = arith.constant 0 : index
    %0 = vector.load %arg1[%c0, %c0_0] : memref<12x128xf32, #tpu.memory_space<vmem>>, vector<12x128xf32>
    %cst = arith.constant 0.000000e+00 : f32
    %1 = vector.broadcast %cst : f32 to vector<12x128xf32>
    %2 = arith.maximumf %0, %1 : vector<12x128xf32>
    %c0_1 = arith.constant 0 : index
    %c0_2 = arith.constant 0 : index
    %3 = vector.load %arg2[%c0_1, %c0_2] : memref<12x128xf32, #tpu.memory_space<vmem>>, vector<12x128xf32>
    tpu.vector_store %arg2[%c0_1, %c0_2], %2 {strides = array<i32>} : memref<12x128xf32, #tpu.memory_space<vmem>>, vector<12x128xf32>,
    return
  }
  func.func @transform_0(%arg0: i32) -> (i32, i32) {
    %c0_i32 = arith.constant 0 : i32
    %c0_i32_0 = arith.constant 0 : i32
    return %arg0, %c0_i32 : i32, i32
  }
  func.func @transform_1(%arg0: i32) -> (i32, i32) {
    %c0_i32 = arith.constant 0 : i32
    %c0_i32_0 = arith.constant 0 : i32
    return %arg0, %c0_i32 : i32, i32
  }
}

</mosaic_0001>

<bundles_post_ra>
// kernel: f1_forward.1
= control target key start
LH: loop header
LB: loop body
LE: loop exit
PB: predicated region body
PF: predicated region fallthrough
CT: control target
= control target key end

     0   :  { %s40_s0 = inlined_call_operand.vmem [shape: f32[12,128], index: 0, kind: input, shape index: {}]   ;;  %s41_s1 = inlined_call_operand.vmem [shape: f32[12,128], index: 1, kind: output, shape index: {}]  }
   0x1   :  { %v8_v0 = vld [vmem:[%s40_s0] sm:$0xff]  ;;  %v9_v1 = vld [vmem:[%s40_s0 + $0x8] sm:$0xf] }
   0x2   :  { %v10_v2 = vmax.f32 %v8_v0, 0.0  ;;  %v11_v3 = vmax.f32 %v9_v1, 0.0 }
   0x4   :  { %12 = vst [vmem:[%s41_s1] sm:$0xff] %v10_v2  ;;  %13 = vst [vmem:[%s41_s1 + $0x8] sm:$0xf] %v11_v3 }

</bundles_post_ra>
